<compile_context>
chip_gen: v7x
topology: tpu7x:2x2x1
jax: 0.10.0
libtpu: 0.0.40
codegen_flags: <defaults>
</compile_context>

<pallas_src>
import functools

import jax
import jax.numpy as jnp
from jax.experimental import pallas as pl
from jax.experimental.pallas import tpu as pltpu


def _round_up(x, m):
    return ((x + m - 1) // m) * m


def _tensorcores_per_chip():
    """Best-effort TensorCore-per-chip count; falls back to 1 (no TM split)."""
    try:
        info = pltpu.get_tpu_info()
        for attr in ("tensorcore_count", "num_tensorcores", "core_count",
                     "num_cores"):
            v = getattr(info, attr, None)
            if isinstance(v, int) and 1 <= v <= 8:
                return v
    except Exception:
        pass
    try:
        d = jax.devices()[0]
        for attr in ("num_cores", "core_count"):
            v = getattr(d, attr, None)
            if isinstance(v, int) and 1 <= v <= 8:
                return v
    except Exception:
        pass
    return 1


def _conv_bn_relu_kernel(p_ref, w_ref, shift_ref, o_ref, *scratch,
                         kt, tk, weight_resident):
    # p_ref:     (TM, TK)            im2col patch tile (bf16)
    # w_ref:     (TK or K_pad, TN)   BN-scaled conv weights (bf16)
    # shift_ref: (1, TN)             folded BN shift = beta - mean * scale (f32)
    # o_ref:     (TM, TN)            output tile (lane-dense, TN % 128 == 0)
    # scratch:   optional (TM, TN) f32 accumulator, only when kt > 1
    k = pl.program_id(2)

    if weight_resident and kt > 1:
        w = w_ref[pl.ds(pl.multiple_of(k * tk, tk), tk), :]
    else:
        w = w_ref[...]

    part = jnp.dot(p_ref[...], w, preferred_element_type=jnp.float32)

    if kt == 1:
        y = part + shift_ref[...]
        o_ref[...] = jnp.maximum(y, 0.0).astype(o_ref.dtype)
    else:
        acc_ref = scratch[0]

        @pl.when(k == 0)
        def _():
            acc_ref[...] = jnp.zeros_like(acc_ref)

        acc_ref[...] += part

        @pl.when(k == kt - 1)
        def _():
            y = acc_ref[...] + shift_ref[...]
            o_ref[...] = jnp.maximum(y, 0.0).astype(o_ref.dtype)


def _im2col_nhwc(x_nhwc, kh, kw, stride, padding, dilation):
    """x: (N, H, W, C) -> patches (N*Ho*Wo, kh*kw*C), plus (Ho, Wo).

    K ordering is (kh, kw, C) with kh slowest; the final reshape is layout
    preserving (no transpose of the KH*KW-amplified array).
    """
    N, H, W, C = x_nhwc.shape
    xp = jnp.pad(x_nhwc, ((0, 0), (padding, padding), (padding, padding), (0, 0)))
    Ho = (H + 2 * padding - dilation * (kh - 1) - 1) // stride + 1
    Wo = (W + 2 * padding - dilation * (kw - 1) - 1) // stride + 1
    slabs = []
    for i in range(kh):
        for j in range(kw):
            hi = i * dilation
            wj = j * dilation
            slabs.append(
                xp[:, hi:hi + (Ho - 1) * stride + 1:stride,
                       wj:wj + (Wo - 1) * stride + 1:stride, :]
            )  # (N, Ho, Wo, C)
    patches = jnp.stack(slabs, axis=3)                  # (N, Ho, Wo, kh*kw, C)
    patches = patches.reshape(N * Ho * Wo, kh * kw * C)
    return patches, Ho, Wo


@functools.partial(
    jax.jit,
    static_argnames=("stride", "padding", "dilation", "groups", "compute_dtype"))
def basic_conv_forward(x, weight, gamma, beta, running_mean, running_var,
                       *, stride=1, padding=0, dilation=1, groups=1,
                       eps=1e-5, compute_dtype=jnp.bfloat16):
    """BasicConv forward. x: (N, Cin, H, W) NCHW, weight: (Cout, Cin, KH, KW)."""
    if groups != 1:
        raise NotImplementedError("BasicConv Pallas kernel supports groups=1 only")

    N, Cin, H, W = x.shape
    Cout, _, KH, KW = weight.shape
    out_dtype = x.dtype

    # NCHW -> NHWC once (cheap, 1x input bytes) and cast to the MXU dtype
    # before the KH*KW-amplified im2col.
    x_nhwc = jnp.transpose(x, (0, 2, 3, 1)).astype(compute_dtype)
    patches, Ho, Wo = _im2col_nhwc(x_nhwc, KH, KW, stride, padding, dilation)
    M, K = patches.shape  # M = N*Ho*Wo, K = KH*KW*Cin

    # Fold BatchNorm (inference) into the weights + a per-channel shift.
    scale = gamma / jnp.sqrt(running_var + eps)             # (Cout,)
    shift = (beta - running_mean * scale).reshape(1, Cout)   # (1, Cout) f32
    shift = shift.astype(jnp.float32)
    # Weight -> (K, Cout) with K ordering (kh, kw, cin) matching the patches.
    w2d = weight.transpose(2, 3, 1, 0).reshape(K, Cout)
    w2d = (w2d * scale[None, :]).astype(compute_dtype)       # BN scale folded

    op_itemsize = jnp.dtype(compute_dtype).itemsize
    out_itemsize = jnp.dtype(out_dtype).itemsize

    # ---- Tile sizing ------------------------------------------------------
    # Lane-pad Cout; when Cout > 128 align to 256 so TN=256 feeds the
    # 256-wide MXU N dimension on v6e/v7x.
    if Cout <= 128:
        Cout_pad, TN = 128, 128
    else:
        Cout_pad = _round_up(Cout, 256)
        TN = 256
    NT = Cout_pad // TN

    # K: a single full-extent block up to 2048 (no padding waste, no
    # accumulator); 512-wide tiles with a K-reduction axis beyond that.
    if K <= 2048:
        TK, K_pad = K, K
    else:
        TK = 512
        K_pad = _round_up(K, TK)
    KT = K_pad // TK

    # M: big tiles (less per-step overhead).  Only shrink TM when the chip
    # actually has >1 TensorCore and there would otherwise be a single
    # parallel grid step.
    TM = min(512, _round_up(M, 8))
    MT = pl.cdiv(M, TM)
    n_cores = _tensorcores_per_chip()
    if n_cores > 1 and MT * NT < n_cores and M > 8 * n_cores:
        TM = max(8, _round_up(pl.cdiv(M, n_cores), 8))
        MT = pl.cdiv(M, TM)

    # Keep the weight panel resident in VMEM when its block index is constant
    # across the whole grid (NT == 1) and it comfortably fits.
    weight_resident = (NT == 1) and (K_pad * TN * op_itemsize <= 8 * 1024 * 1024)

    # ---- Padding (K zeros for correctness, Cout lanes; never M) -----------
    if K_pad != K:
        patches = jnp.pad(patches, ((0, 0), (0, K_pad - K)))
    if (K_pad != K) or (Cout_pad != Cout):
        w2d = jnp.pad(w2d, ((0, K_pad - K), (0, Cout_pad - Cout)))
    if Cout_pad != Cout:
        shift = jnp.pad(shift, ((0, 0), (0, Cout_pad - Cout)))

    # ---- VMEM budget (tiles are small; don't request all of v7x's 64 MiB) --
    w_kdim = K_pad if weight_resident else TK
    vmem_need = (
        2 * TM * TK * op_itemsize          # patches, double-buffered
        + 2 * w_kdim * TN * op_itemsize    # weights (conservatively 2 bufs)
        + 2 * 8 * TN * 4                   # shift (sublane-padded)
        + 2 * TM * TN * out_itemsize       # output, double-buffered
        + (TM * TN * 4 if KT > 1 else 0)   # f32 accumulator scratch
    )
    vmem_limit = max(16 * 1024 * 1024,
                     min(48 * 1024 * 1024,
                         _round_up(vmem_need + 4 * 1024 * 1024, 1 << 20)))

    kernel = functools.partial(_conv_bn_relu_kernel, kt=KT, tk=TK,
                               weight_resident=weight_resident)

    if weight_resident:
        w_spec = pl.BlockSpec((K_pad, TN), lambda i, j, k: (0, j))
    else:
        w_spec = pl.BlockSpec((TK, TN), lambda i, j, k: (k, j))

    scratch_shapes = [pltpu.VMEM((TM, TN), jnp.float32)] if KT > 1 else []

    out_flat = pl.pallas_call(
        kernel,
        out_shape=jax.ShapeDtypeStruct((M, Cout_pad), out_dtype),
        grid_spec=pltpu.PrefetchScalarGridSpec(
            num_scalar_prefetch=0,
            grid=(MT, NT, KT),
            in_specs=[
                pl.BlockSpec((TM, TK), lambda i, j, k: (i, k)),
                w_spec,
                pl.BlockSpec((1, TN), lambda i, j, k: (0, j)),
            ],
            out_specs=pl.BlockSpec((TM, TN), lambda i, j, k: (i, j)),
            scratch_shapes=scratch_shapes,
        ),
        compiler_params=pltpu.CompilerParams(
            dimension_semantics=("parallel", "parallel", "arbitrary"),
            vmem_limit_bytes=vmem_limit,
        ),
    )(patches, w2d, shift)

    out_flat = out_flat[:M, :Cout]  # drop padded lanes (M never padded now)
    # (N*Ho*Wo, Cout) -> NCHW (required output layout of the module).
    out = out_flat.reshape(N, Ho, Wo, Cout).transpose(0, 3, 1, 2)
    return out


def _reference(x, weight, gamma, beta, running_mean, running_var,
               stride, padding, dilation, eps=1e-5):
    y = jax.lax.conv_general_dilated(
        x, weight,
        window_strides=(stride, stride),
        padding=[(padding, padding), (padding, padding)],
        rhs_dilation=(dilation, dilation),
        dimension_numbers=("NCHW", "OIHW", "NCHW"),
    )
    s = (gamma / jnp.sqrt(running_var + eps)).reshape(1, -1, 1, 1)
    b = beta.reshape(1, -1, 1, 1) - running_mean.reshape(1, -1, 1, 1) * s
    return jnp.maximum(y * s + b, 0.0)


if __name__ == "__main__":
    # BasicConv(in_planes=4, out_planes=8, kernel_size=3, stride=1, padding=1)
    N, Cin, H, W = 2, 4, 16, 16
    Cout, KH, KW = 8, 3, 3
    stride, padding, dilation = 1, 1, 1

    key = jax.random.PRNGKey(0)
    kx, kw, kg, kb, km, kv = jax.random.split(key, 6)

    x = jax.random.normal(kx, (N, Cin, H, W), dtype=jnp.float32)
    weight = jax.random.normal(kw, (Cout, Cin, KH, KW), dtype=jnp.float32) * 0.1
    gamma = 1.0 + 0.1 * jax.random.normal(kg, (Cout,), dtype=jnp.float32)
    beta = 0.1 * jax.random.normal(kb, (Cout,), dtype=jnp.float32)
    running_mean = 0.1 * jax.random.normal(km, (Cout,), dtype=jnp.float32)
    running_var = jnp.abs(jax.random.normal(kv, (Cout,), dtype=jnp.float32)) + 0.5

    out = basic_conv_forward(x, weight, gamma, beta, running_mean, running_var,
                             stride=stride, padding=padding, dilation=dilation)
    out = jax.block_until_ready(out)

    ref = _reference(x, weight, gamma, beta, running_mean, running_var,
                     stride, padding, dilation)
    assert out.shape == (N, Cout, H, W), out.shape
    # bf16 MXU operands (f32 accumulation) -> relaxed tolerance.
    assert jnp.allclose(out, ref, atol=3e-2, rtol=3e-2), \
        float(jnp.max(jnp.abs(out - ref)))

    print("KERNEL_OK")
</pallas_src>

<mosaic_0001>
module attributes {stable_mosaic.version = 11 : i64} {
  func.func @_conv_bn_relu_kernel(%arg0: i32, %arg1: i32, %arg2: i32, %arg3: memref<512x36xbf16, #tpu.memory_space<vmem>>, %arg4: memref<36x128xbf16, #tpu.memory_space<vmem>>, %arg5: memref<1x128xf32, #tpu.memory_space<vmem>>, %arg6: memref<512x128xf32, #tpu.memory_space<vmem>>) attributes {dimension_semantics = [#tpu.dimension_semantics<parallel>, #tpu.dimension_semantics<parallel>, #tpu.dimension_semantics<arbitrary>], iteration_bounds = array<i64: 1, 1, 1>, scalar_prefetch = 0 : i64, scratch_operands = 0 : i64, tpu.core_type = #tpu.core_type<tc>, window_params = [{transform_indices = @transform_0, window_bounds = array<i64: 512, 36>}, {transform_indices = @transform_1, window_bounds = array<i64: 36, 128>}, {transform_indices = @transform_2, window_bounds = array<i64: 1, 128>}, {transform_indices = @transform_3, window_bounds = array<i64: 512, 128>}]} {
    %c0 = arith.constant 0 : index
    %c0_0 = arith.constant 0 : index
    %0 = vector.load %arg4[%c0, %c0_0] : memref<36x128xbf16, #tpu.memory_space<vmem>>, vector<36x128xbf16>
    %c0_1 = arith.constant 0 : index
    %c0_2 = arith.constant 0 : index
    %1 = vector.load %arg3[%c0_1, %c0_2] : memref<512x36xbf16, #tpu.memory_space<vmem>>, vector<512x36xbf16>
    %cst = arith.constant dense<0.000000e+00> : vector<512x128xf32>
    %2 = tpu.matmul %1, %0, %cst {dimension_numbers = #tpu.dot_dimension_numbers<[1], [0], [0], [1], [0, 0, 1, 1], [], []>} : vector<512x36xbf16>, vector<36x128xbf16>, vector<512x128xf32> -> vector<512x128xf32>
    %c0_3 = arith.constant 0 : index
    %c0_4 = arith.constant 0 : index
    %3 = vector.load %arg5[%c0_3, %c0_4] : memref<1x128xf32, #tpu.memory_space<vmem>>, vector<1x128xf32>
    %4 = vector.broadcast %3 : vector<1x128xf32> to vector<512x128xf32>
    %5 = arith.addf %2, %4 : vector<512x128xf32>
    %cst_5 = arith.constant 0.000000e+00 : f32
    %6 = vector.broadcast %cst_5 : f32 to vector<512x128xf32>
    %7 = arith.maximumf %5, %6 : vector<512x128xf32>
    %c0_6 = arith.constant 0 : index
    %c0_7 = arith.constant 0 : index
    %8 = vector.load %arg6[%c0_6, %c0_7] : memref<512x128xf32, #tpu.memory_space<vmem>>, vector<512x128xf32>
    tpu.vector_store %arg6[%c0_6, %c0_7], %7 {strides = array<i32>} : memref<512x128xf32, #tpu.memory_space<vmem>>, vector<512x128xf32>,
    return
  }
  func.func @transform_0(%arg0: i32, %arg1: i32, %arg2: i32) -> (i32, i32) {
    %c0_i32 = arith.constant 0 : i32
    return %arg0, %arg2 : i32, i32
  }
  func.func @transform_1(%arg0: i32, %arg1: i32, %arg2: i32) -> (i32, i32) {
    %c0_i32 = arith.constant 0 : i32
    %c0_i32_0 = arith.constant 0 : i32
    return %c0_i32, %arg1 : i32, i32
  }
  func.func @transform_2(%arg0: i32, %arg1: i32, %arg2: i32) -> (i32, i32) {
    %c0_i32 = arith.constant 0 : i32
    %c0_i32_0 = arith.constant 0 : i32
    return %c0_i32, %arg1 : i32, i32
  }
  func.func @transform_3(%arg0: i32, %arg1: i32, %arg2: i32) -> (i32, i32) {
    %c0_i32 = arith.constant 0 : i32
    return %arg0, %arg1 : i32, i32
  }
}

</mosaic_0001>

<bundles_post_ra>
// kernel: basic_conv_forward.1
= control target key start
LH: loop header
LB: loop body
LE: loop exit
PB: predicated region body
PF: predicated region fallthrough
CT: control target
= control target key end

     0   :  { %vm266_vm0 = vcmask 293888   ;;  %vm363_vm1 = vcmask 1041408   ;;  %s1422_s1 = inlined_call_operand.vmem [shape: bf16[36,128], index: 1, kind: input, shape index: {}]   ;;  %s1423_s0 = inlined_call_operand.vmem [shape: bf16[512,36], index: 0, kind: input, shape index: {}]   ;;  %s1424_s2 = inlined_call_operand.vmem [shape: f32[1,128], index: 2, kind: input, shape index: {}]   ;;  %s1425_s3 = inlined_call_operand.vmem [shape: f32[512,128], index: 3, kind: output, shape index: {}]  }
   0x1   :  { %v969_v0 = vld [vmem:[%s1422_s1] sm:$0xff]   ;;  %v970_v1 = vld [vmem:[%s1422_s1 + $0x8] sm:$0xff]   ;;  %v971_v2 = vld [vmem:[%s1422_s1 + $0x10] ss:$0 sps:$4 sm:$0x33]  }
   0x2   :  { %891 = vmatprep.subr.bf16.mxu0 %v969_v0  ;;  %961 = vmatprep.subr.bf16.mxu1 %v969_v0  ;;  %v972_v3 = vld [vmem:[%s1423_s0] sm:$0xff]   ;;  %v365_v5 = vsel %vm363_vm1, %v971_v2, 0  ;;  %v974_v6 = vld [vmem:[%s1423_s0 + $0x8] sm:$0xff]   ;;  %v976_v8 = vld [vmem:[%s1423_s0 + $0x10] sm:$0xff]  }
   0x3   :  { %892 = vmatpush3.bf16.msra.mxu0 %v969_v0  ;;  %964 = vmatpush3.bf16.msra.mxu1 %v969_v0  ;;  %v973_v4 = vld [vmem:[%s1423_s0 + $0x80] sm:$0xff]   ;;  %v975_v7 = vld [vmem:[%s1423_s0 + $0x88] sm:$0xff]   ;;  %v977_v9 = vld [vmem:[%s1423_s0 + $0x90] sm:$0xff]  }
   0x4   :  { %893 = vmatprep.subr.bf16.mxu0 %v970_v1  ;;  %962 = vmatprep.subr.bf16.mxu1 %v970_v1  ;;  %v978_v10 = vld [vmem:[%s1423_s0 + $0x18] sm:$0xff]   ;;  %v980_v12 = vld [vmem:[%s1423_s0 + $0x20] sm:$0xff]   ;;  %v982_v14 = vld [vmem:[%s1423_s0 + $0x28] sm:$0xff]  }
   0x5   :  { %897 = vmatprep.mubr.msk.bf16.mxu0 %vm266_vm0, %v972_v3  ;;  %929 = vmatprep.mubr.msk.bf16.mxu1 %vm266_vm0, %v973_v4  ;;  %v979_v11 = vld [vmem:[%s1423_s0 + $0x98] sm:$0xff]   ;;  %v981_v13 = vld [vmem:[%s1423_s0 + $0xa0] sm:$0xff]   ;;  %v983_v15 = vld [vmem:[%s1423_s0 + $0xa8] sm:$0xff]  }
   0x6   :  { %v984_v16 = vld [vmem:[%s1423_s0 + $0x30] sm:$0xff]   ;;  %v986_v18 = vld [vmem:[%s1423_s0 + $0x38] sm:$0xff]   ;;  %v988_v20 = vld [vmem:[%s1423_s0 + $0x40] sm:$0xff]  }
   0x7   :  { %894 = vmatpush3.bf16.msra.mxu0 %v970_v1  ;;  %965 = vmatpush3.bf16.msra.mxu1 %v970_v1  ;;  %v985_v17 = vld [vmem:[%s1423_s0 + $0xb0] sm:$0xff]   ;;  %v987_v19 = vld [vmem:[%s1423_s0 + $0xb8] sm:$0xff]   ;;  %v989_v21 = vld [vmem:[%s1423_s0 + $0xc0] sm:$0xff]  }
   0x8   :  { %967 = vmatprep.subr.msk.bf16.mxu0 %vm363_vm1, %v971_v2  ;;  %968 = vmatprep.subr.msk.bf16.mxu1 %vm363_vm1, %v971_v2  ;;  %v990_v22 = vld [vmem:[%s1423_s0 + $0x48] sm:$0xff]   ;;  %v992_v24 = vld [vmem:[%s1423_s0 + $0x50] sm:$0xff]   ;;  %v994_v26 = vld [vmem:[%s1423_s0 + $0x58] sm:$0xff]  }
   0x9   :  { %v991_v23 = vld [vmem:[%s1423_s0 + $0xc8] sm:$0xff]   ;;  %v993_v25 = vld [vmem:[%s1423_s0 + $0xd0] sm:$0xff]   ;;  %v995_v27 = vld [vmem:[%s1423_s0 + $0xd8] sm:$0xff]  }
   0xa   :  { %v996_v28 = vld [vmem:[%s1423_s0 + $0x60] sm:$0xff]   ;;  %v998_v30 = vld [vmem:[%s1423_s0 + $0x68] sm:$0xff]   ;;  %v1000_v32 = vld [vmem:[%s1423_s0 + $0x70] sm:$0xff]  }
   0xb   :  { %896 = vmatpush3.bf16.msra.mxu0 %v365_v5  ;;  %966 = vmatpush3.bf16.msra.mxu1 %v365_v5  ;;  %v997_v29 = vld [vmem:[%s1423_s0 + $0xe0] sm:$0xff]   ;;  %v999_v31 = vld [vmem:[%s1423_s0 + $0xe8] sm:$0xff]   ;;  %v1001_v33 = vld [vmem:[%s1423_s0 + $0xf0] sm:$0xff]  }
   0xc   :  { %v1002_v34 = vld [vmem:[%s1423_s0 + $0x78] sm:$0xff]   ;;  %v1164_v36 = vld [vmem:[%s1424_s2] ss:$0 sm:$0xff] }
   0xd   :  { %v1003_v35 = vld [vmem:[%s1423_s0 + $0xf8] sm:$0xff]  }
   0xe   :  { %898 = vmatmul.mubr.msk.bf16.vlgmr.msra.gmra.mrb[0].mxu0 %vm266_vm0, %v974_v6  ;;  %930 = vmatmul.mubr.msk.bf16.vlgmr.msra.gmra.mrb[0].mxu1 %vm266_vm0, %v975_v7 }
   0xf   :  { %901 = vmatprep.mubr.msk.bf16.mxu0 %vm266_vm0, %v976_v8  ;;  %933 = vmatprep.mubr.msk.bf16.mxu1 %vm266_vm0, %v977_v9 }
  0x16   :  { %902 = vmatmul.mubr.msk.bf16.gmra.mrb[4].mxu0 %vm266_vm0, %v978_v10  ;;  %934 = vmatmul.mubr.msk.bf16.gmra.mrb[4].mxu1 %vm266_vm0, %v979_v11 }
  0x17   :  { %905 = vmatprep.mubr.msk.bf16.mxu0 %vm266_vm0, %v980_v12  ;;  %937 = vmatprep.mubr.msk.bf16.mxu1 %vm266_vm0, %v981_v13 }
  0x1e   :  { %906 = vmatmul.mubr.msk.bf16.gmra.mrb[8].mxu0 %vm266_vm0, %v982_v14  ;;  %938 = vmatmul.mubr.msk.bf16.gmra.mrb[8].mxu1 %vm266_vm0, %v983_v15 }
  0x1f   :  { %909 = vmatprep.mubr.msk.bf16.mxu0 %vm266_vm0, %v984_v16  ;;  %941 = vmatprep.mubr.msk.bf16.mxu1 %vm266_vm0, %v985_v17 }
  0x26   :  { %910 = vmatmul.mubr.msk.bf16.gmra.mrb[12].mxu0 %vm266_vm0, %v986_v18  ;;  %942 = vmatmul.mubr.msk.bf16.gmra.mrb[12].mxu1 %vm266_vm0, %v987_v19 }
  0x27   :  { %913 = vmatprep.mubr.msk.bf16.mxu0 %vm266_vm0, %v988_v20  ;;  %945 = vmatprep.mubr.msk.bf16.mxu1 %vm266_vm0, %v989_v21 }
  0x2e   :  { %914 = vmatmul.mubr.msk.bf16.gmra.mrb[16].mxu0 %vm266_vm0, %v990_v22  ;;  %946 = vmatmul.mubr.msk.bf16.gmra.mrb[16].mxu1 %vm266_vm0, %v991_v23 }
  0x2f   :  { %917 = vmatprep.mubr.msk.bf16.mxu0 %vm266_vm0, %v992_v24  ;;  %949 = vmatprep.mubr.msk.bf16.mxu1 %vm266_vm0, %v993_v25 }
  0x36   :  { %918 = vmatmul.mubr.msk.bf16.gmra.mrb[20].mxu0 %vm266_vm0, %v994_v26  ;;  %950 = vmatmul.mubr.msk.bf16.gmra.mrb[20].mxu1 %vm266_vm0, %v995_v27 }
  0x37   :  { %921 = vmatprep.mubr.msk.bf16.mxu0 %vm266_vm0, %v996_v28  ;;  %953 = vmatprep.mubr.msk.bf16.mxu1 %vm266_vm0, %v997_v29 }
  0x3e   :  { %922 = vmatmul.mubr.msk.bf16.gmra.mrb[24].mxu0 %vm266_vm0, %v998_v30  ;;  %954 = vmatmul.mubr.msk.bf16.gmra.mrb[24].mxu1 %vm266_vm0, %v999_v31 }
  0x3f   :  { %925 = vmatprep.mubr.msk.bf16.mxu0 %vm266_vm0, %v1000_v32  ;;  %957 = vmatprep.mubr.msk.bf16.mxu1 %vm266_vm0, %v1001_v33 }
  0x46   :  { %926 = vmatmul.mubr.msk.bf16.gmra.mrb[28].mxu0 %vm266_vm0, %v1002_v34  ;;  %958 = vmatmul.mubr.msk.bf16.gmra.mrb[28].mxu1 %vm266_vm0, %v1003_v35 }
  0xe1   :  { %v899_v37 = vpop.f32.mrb[0].mxu0  ;;  %v931_v38 = vpop.f32.mrb[0].mxu1 }
  0xe2   :  { %v410_v39 = vadd.f32 %v899_v37, %v1164_v36  ;;  %v538_v40 = vadd.f32 %v931_v38, %v1164_v36  ;;  %v401_v41 = vpop.f32.mrb[1].mxu0  ;;  %v529_v42 = vpop.f32.mrb[1].mxu1 }
  0xe3   :  { %v402_v43 = vadd.f32 %v1164_v36, %v401_v41  ;;  %v530_v44 = vadd.f32 %v1164_v36, %v529_v42  ;;  %v900_v45 = vpop.f32.mrb[2].mxu0  ;;  %v932_v46 = vpop.f32.mrb[2].mxu1 }
  0xe4   :  { %v658_v47 = vmax.f32 %v410_v39, 0.0  ;;  %v690_v48 = vmax.f32 %v538_v40, 0.0  ;;  %v413_v49 = vadd.f32 %v900_v45, %v1164_v36  ;;  %v541_v50 = vadd.f32 %v932_v46, %v1164_v36  ;;  %v404_v51 = vpop.f32.mrb[3].mxu0  ;;  %v532_v52 = vpop.f32.mrb[3].mxu1 }
  0xe5   :  { %v656_v53 = vmax.f32 %v402_v43, 0.0  ;;  %v688_v54 = vmax.f32 %v530_v44, 0.0  ;;  %v405_v55 = vadd.f32 %v1164_v36, %v404_v51  ;;  %v533_v56 = vadd.f32 %v1164_v36, %v532_v52 }
  0xe6   :  { %722 = vst [vmem:[%s1425_s3 + $0x10] sm:$0xff] %v658_v47  ;;  %754 = vst [vmem:[%s1425_s3 + $0x110] sm:$0xff] %v690_v48  ;;  %v659_v57 = vmax.f32 %v413_v49, 0.0  ;;  %v691_v58 = vmax.f32 %v541_v50, 0.0 }
  0xe7   :  { %720 = vst [vmem:[%s1425_s3] sm:$0xff] %v656_v53  ;;  %752 = vst [vmem:[%s1425_s3 + $0x100] sm:$0xff] %v688_v54  ;;  %v657_v59 = vmax.f32 %v405_v55, 0.0  ;;  %v689_v60 = vmax.f32 %v533_v56, 0.0 }
  0xe8   :  { %723 = vst [vmem:[%s1425_s3 + $0x18] sm:$0xff] %v659_v57  ;;  %755 = vst [vmem:[%s1425_s3 + $0x118] sm:$0xff] %v691_v58 }
  0xe9   :  { %721 = vst [vmem:[%s1425_s3 + $0x8] sm:$0xff] %v657_v59  ;;  %753 = vst [vmem:[%s1425_s3 + $0x108] sm:$0xff] %v689_v60  ;;  %v903_v61 = vpop.f32.mrb[4].mxu0  ;;  %v935_v62 = vpop.f32.mrb[4].mxu1 }
  0xea   :  { %v426_v63 = vadd.f32 %v903_v61, %v1164_v36  ;;  %v554_v0 = vadd.f32 %v935_v62, %v1164_v36  ;;  %v417_v1 = vpop.f32.mrb[5].mxu0  ;;  %v545_v2 = vpop.f32.mrb[5].mxu1 }
  0xeb   :  { %v418_v3 = vadd.f32 %v1164_v36, %v417_v1  ;;  %v546_v4 = vadd.f32 %v1164_v36, %v545_v2  ;;  %v904_v5 = vpop.f32.mrb[6].mxu0  ;;  %v936_v6 = vpop.f32.mrb[6].mxu1 }
  0xec   :  { %v662_v7 = vmax.f32 %v426_v63, 0.0  ;;  %v694_v8 = vmax.f32 %v554_v0, 0.0  ;;  %v429_v9 = vadd.f32 %v904_v5, %v1164_v36  ;;  %v557_v10 = vadd.f32 %v936_v6, %v1164_v36  ;;  %v420_v11 = vpop.f32.mrb[7].mxu0  ;;  %v548_v12 = vpop.f32.mrb[7].mxu1 }
  0xed   :  { %v660_v13 = vmax.f32 %v418_v3, 0.0  ;;  %v692_v14 = vmax.f32 %v546_v4, 0.0  ;;  %v421_v15 = vadd.f32 %v1164_v36, %v420_v11  ;;  %v549_v16 = vadd.f32 %v1164_v36, %v548_v12 }
  0xee   :  { %726 = vst [vmem:[%s1425_s3 + $0x30] sm:$0xff] %v662_v7  ;;  %758 = vst [vmem:[%s1425_s3 + $0x130] sm:$0xff] %v694_v8  ;;  %v663_v17 = vmax.f32 %v429_v9, 0.0  ;;  %v695_v18 = vmax.f32 %v557_v10, 0.0 }
  0xef   :  { %724 = vst [vmem:[%s1425_s3 + $0x20] sm:$0xff] %v660_v13  ;;  %756 = vst [vmem:[%s1425_s3 + $0x120] sm:$0xff] %v692_v14  ;;  %v661_v19 = vmax.f32 %v421_v15, 0.0  ;;  %v693_v20 = vmax.f32 %v549_v16, 0.0 }
  0xf0   :  { %727 = vst [vmem:[%s1425_s3 + $0x38] sm:$0xff] %v663_v17  ;;  %759 = vst [vmem:[%s1425_s3 + $0x138] sm:$0xff] %v695_v18 }
  0xf1   :  { %725 = vst [vmem:[%s1425_s3 + $0x28] sm:$0xff] %v661_v19  ;;  %757 = vst [vmem:[%s1425_s3 + $0x128] sm:$0xff] %v693_v20  ;;  %v907_v21 = vpop.f32.mrb[8].mxu0  ;;  %v939_v22 = vpop.f32.mrb[8].mxu1 }
  0xf2   :  { %v442_v23 = vadd.f32 %v907_v21, %v1164_v36  ;;  %v570_v24 = vadd.f32 %v939_v22, %v1164_v36  ;;  %v433_v25 = vpop.f32.mrb[9].mxu0  ;;  %v561_v26 = vpop.f32.mrb[9].mxu1 }
  0xf3   :  { %v434_v27 = vadd.f32 %v1164_v36, %v433_v25  ;;  %v562_v28 = vadd.f32 %v1164_v36, %v561_v26  ;;  %v908_v29 = vpop.f32.mrb[10].mxu0  ;;  %v940_v30 = vpop.f32.mrb[10].mxu1 }
  0xf4   :  { %v666_v31 = vmax.f32 %v442_v23, 0.0  ;;  %v698_v32 = vmax.f32 %v570_v24, 0.0  ;;  %v445_v33 = vadd.f32 %v908_v29, %v1164_v36  ;;  %v573_v34 = vadd.f32 %v940_v30, %v1164_v36  ;;  %v436_v35 = vpop.f32.mrb[11].mxu0  ;;  %v564_v37 = vpop.f32.mrb[11].mxu1 }
  0xf5   :  { %v664_v38 = vmax.f32 %v434_v27, 0.0  ;;  %v696_v39 = vmax.f32 %v562_v28, 0.0  ;;  %v437_v40 = vadd.f32 %v1164_v36, %v436_v35  ;;  %v565_v41 = vadd.f32 %v1164_v36, %v564_v37 }
  0xf6   :  { %730 = vst [vmem:[%s1425_s3 + $0x50] sm:$0xff] %v666_v31  ;;  %762 = vst [vmem:[%s1425_s3 + $0x150] sm:$0xff] %v698_v32  ;;  %v667_v42 = vmax.f32 %v445_v33, 0.0  ;;  %v699_v43 = vmax.f32 %v573_v34, 0.0 }
  0xf7   :  { %728 = vst [vmem:[%s1425_s3 + $0x40] sm:$0xff] %v664_v38  ;;  %760 = vst [vmem:[%s1425_s3 + $0x140] sm:$0xff] %v696_v39  ;;  %v665_v44 = vmax.f32 %v437_v40, 0.0  ;;  %v697_v45 = vmax.f32 %v565_v41, 0.0 }
  0xf8   :  { %731 = vst [vmem:[%s1425_s3 + $0x58] sm:$0xff] %v667_v42  ;;  %763 = vst [vmem:[%s1425_s3 + $0x158] sm:$0xff] %v699_v43 }
  0xf9   :  { %729 = vst [vmem:[%s1425_s3 + $0x48] sm:$0xff] %v665_v44  ;;  %761 = vst [vmem:[%s1425_s3 + $0x148] sm:$0xff] %v697_v45  ;;  %v911_v46 = vpop.f32.mrb[12].mxu0  ;;  %v943_v47 = vpop.f32.mrb[12].mxu1 }
  0xfa   :  { %v458_v48 = vadd.f32 %v911_v46, %v1164_v36  ;;  %v586_v49 = vadd.f32 %v943_v47, %v1164_v36  ;;  %v449_v50 = vpop.f32.mrb[13].mxu0  ;;  %v577_v51 = vpop.f32.mrb[13].mxu1 }
  0xfb   :  { %v450_v52 = vadd.f32 %v1164_v36, %v449_v50  ;;  %v578_v53 = vadd.f32 %v1164_v36, %v577_v51  ;;  %v912_v54 = vpop.f32.mrb[14].mxu0  ;;  %v944_v55 = vpop.f32.mrb[14].mxu1 }
  0xfc   :  { %v670_v56 = vmax.f32 %v458_v48, 0.0  ;;  %v702_v57 = vmax.f32 %v586_v49, 0.0  ;;  %v461_v58 = vadd.f32 %v912_v54, %v1164_v36  ;;  %v589_v59 = vadd.f32 %v944_v55, %v1164_v36  ;;  %v452_v60 = vpop.f32.mrb[15].mxu0  ;;  %v580_v61 = vpop.f32.mrb[15].mxu1 }
  0xfd   :  { %v668_v62 = vmax.f32 %v450_v52, 0.0  ;;  %v700_v63 = vmax.f32 %v578_v53, 0.0  ;;  %v453_v0 = vadd.f32 %v1164_v36, %v452_v60  ;;  %v581_v1 = vadd.f32 %v1164_v36, %v580_v61 }
  0xfe   :  { %734 = vst [vmem:[%s1425_s3 + $0x70] sm:$0xff] %v670_v56  ;;  %766 = vst [vmem:[%s1425_s3 + $0x170] sm:$0xff] %v702_v57  ;;  %v671_v2 = vmax.f32 %v461_v58, 0.0  ;;  %v703_v3 = vmax.f32 %v589_v59, 0.0 }
  0xff   :  { %732 = vst [vmem:[%s1425_s3 + $0x60] sm:$0xff] %v668_v62  ;;  %764 = vst [vmem:[%s1425_s3 + $0x160] sm:$0xff] %v700_v63  ;;  %v669_v4 = vmax.f32 %v453_v0, 0.0  ;;  %v701_v5 = vmax.f32 %v581_v1, 0.0 }
 0x100   :  { %735 = vst [vmem:[%s1425_s3 + $0x78] sm:$0xff] %v671_v2  ;;  %767 = vst [vmem:[%s1425_s3 + $0x178] sm:$0xff] %v703_v3 }
 0x101   :  { %733 = vst [vmem:[%s1425_s3 + $0x68] sm:$0xff] %v669_v4  ;;  %765 = vst [vmem:[%s1425_s3 + $0x168] sm:$0xff] %v701_v5  ;;  %v915_v6 = vpop.f32.mrb[16].mxu0  ;;  %v947_v7 = vpop.f32.mrb[16].mxu1 }
 0x102   :  { %v474_v8 = vadd.f32 %v915_v6, %v1164_v36  ;;  %v602_v9 = vadd.f32 %v947_v7, %v1164_v36  ;;  %v465_v10 = vpop.f32.mrb[17].mxu0  ;;  %v593_v11 = vpop.f32.mrb[17].mxu1 }
 0x103   :  { %v466_v12 = vadd.f32 %v1164_v36, %v465_v10  ;;  %v594_v13 = vadd.f32 %v1164_v36, %v593_v11  ;;  %v916_v14 = vpop.f32.mrb[18].mxu0  ;;  %v948_v15 = vpop.f32.mrb[18].mxu1 }
 0x104   :  { %v674_v16 = vmax.f32 %v474_v8, 0.0  ;;  %v706_v17 = vmax.f32 %v602_v9, 0.0  ;;  %v477_v18 = vadd.f32 %v916_v14, %v1164_v36  ;;  %v605_v19 = vadd.f32 %v948_v15, %v1164_v36  ;;  %v468_v20 = vpop.f32.mrb[19].mxu0  ;;  %v596_v21 = vpop.f32.mrb[19].mxu1 }
 0x105   :  { %v672_v22 = vmax.f32 %v466_v12, 0.0  ;;  %v704_v23 = vmax.f32 %v594_v13, 0.0  ;;  %v469_v24 = vadd.f32 %v1164_v36, %v468_v20  ;;  %v597_v25 = vadd.f32 %v1164_v36, %v596_v21 }
 0x106   :  { %738 = vst [vmem:[%s1425_s3 + $0x90] sm:$0xff] %v674_v16  ;;  %770 = vst [vmem:[%s1425_s3 + $0x190] sm:$0xff] %v706_v17  ;;  %v675_v26 = vmax.f32 %v477_v18, 0.0  ;;  %v707_v27 = vmax.f32 %v605_v19, 0.0 }
 0x107   :  { %736 = vst [vmem:[%s1425_s3 + $0x80] sm:$0xff] %v672_v22  ;;  %768 = vst [vmem:[%s1425_s3 + $0x180] sm:$0xff] %v704_v23  ;;  %v673_v28 = vmax.f32 %v469_v24, 0.0  ;;  %v705_v29 = vmax.f32 %v597_v25, 0.0 }
 0x108   :  { %739 = vst [vmem:[%s1425_s3 + $0x98] sm:$0xff] %v675_v26  ;;  %771 = vst [vmem:[%s1425_s3 + $0x198] sm:$0xff] %v707_v27 }
 0x109   :  { %737 = vst [vmem:[%s1425_s3 + $0x88] sm:$0xff] %v673_v28  ;;  %769 = vst [vmem:[%s1425_s3 + $0x188] sm:$0xff] %v705_v29  ;;  %v919_v30 = vpop.f32.mrb[20].mxu0  ;;  %v951_v31 = vpop.f32.mrb[20].mxu1 }
 0x10a   :  { %v490_v32 = vadd.f32 %v919_v30, %v1164_v36  ;;  %v618_v33 = vadd.f32 %v951_v31, %v1164_v36  ;;  %v481_v34 = vpop.f32.mrb[21].mxu0  ;;  %v609_v35 = vpop.f32.mrb[21].mxu1 }
 0x10b   :  { %v482_v37 = vadd.f32 %v1164_v36, %v481_v34  ;;  %v610_v38 = vadd.f32 %v1164_v36, %v609_v35  ;;  %v920_v39 = vpop.f32.mrb[22].mxu0  ;;  %v952_v40 = vpop.f32.mrb[22].mxu1 }
 0x10c   :  { %v678_v41 = vmax.f32 %v490_v32, 0.0  ;;  %v710_v42 = vmax.f32 %v618_v33, 0.0  ;;  %v493_v43 = vadd.f32 %v920_v39, %v1164_v36  ;;  %v621_v44 = vadd.f32 %v952_v40, %v1164_v36  ;;  %v484_v45 = vpop.f32.mrb[23].mxu0  ;;  %v612_v46 = vpop.f32.mrb[23].mxu1 }
 0x10d   :  { %v676_v47 = vmax.f32 %v482_v37, 0.0  ;;  %v708_v48 = vmax.f32 %v610_v38, 0.0  ;;  %v485_v49 = vadd.f32 %v1164_v36, %v484_v45  ;;  %v613_v50 = vadd.f32 %v1164_v36, %v612_v46 }
 0x10e   :  { %742 = vst [vmem:[%s1425_s3 + $0xb0] sm:$0xff] %v678_v41  ;;  %774 = vst [vmem:[%s1425_s3 + $0x1b0] sm:$0xff] %v710_v42  ;;  %v679_v51 = vmax.f32 %v493_v43, 0.0  ;;  %v711_v52 = vmax.f32 %v621_v44, 0.0 }
 0x10f   :  { %740 = vst [vmem:[%s1425_s3 + $0xa0] sm:$0xff] %v676_v47  ;;  %772 = vst [vmem:[%s1425_s3 + $0x1a0] sm:$0xff] %v708_v48  ;;  %v677_v53 = vmax.f32 %v485_v49, 0.0  ;;  %v709_v54 = vmax.f32 %v613_v50, 0.0 }
 0x110   :  { %743 = vst [vmem:[%s1425_s3 + $0xb8] sm:$0xff] %v679_v51  ;;  %775 = vst [vmem:[%s1425_s3 + $0x1b8] sm:$0xff] %v711_v52 }
 0x111   :  { %741 = vst [vmem:[%s1425_s3 + $0xa8] sm:$0xff] %v677_v53  ;;  %773 = vst [vmem:[%s1425_s3 + $0x1a8] sm:$0xff] %v709_v54  ;;  %v923_v55 = vpop.f32.mrb[24].mxu0  ;;  %v955_v56 = vpop.f32.mrb[24].mxu1 }
 0x112   :  { %v506_v57 = vadd.f32 %v923_v55, %v1164_v36  ;;  %v634_v58 = vadd.f32 %v955_v56, %v1164_v36  ;;  %v497_v59 = vpop.f32.mrb[25].mxu0  ;;  %v625_v60 = vpop.f32.mrb[25].mxu1 }
 0x113   :  { %v498_v61 = vadd.f32 %v1164_v36, %v497_v59  ;;  %v626_v62 = vadd.f32 %v1164_v36, %v625_v60  ;;  %v924_v63 = vpop.f32.mrb[26].mxu0  ;;  %v956_v0 = vpop.f32.mrb[26].mxu1 }
 0x114   :  { %v682_v1 = vmax.f32 %v506_v57, 0.0  ;;  %v714_v2 = vmax.f32 %v634_v58, 0.0  ;;  %v509_v3 = vadd.f32 %v924_v63, %v1164_v36  ;;  %v637_v4 = vadd.f32 %v956_v0, %v1164_v36  ;;  %v500_v5 = vpop.f32.mrb[27].mxu0  ;;  %v628_v6 = vpop.f32.mrb[27].mxu1 }
 0x115   :  { %v680_v7 = vmax.f32 %v498_v61, 0.0  ;;  %v712_v8 = vmax.f32 %v626_v62, 0.0  ;;  %v501_v9 = vadd.f32 %v1164_v36, %v500_v5  ;;  %v629_v10 = vadd.f32 %v1164_v36, %v628_v6 }
 0x116   :  { %746 = vst [vmem:[%s1425_s3 + $0xd0] sm:$0xff] %v682_v1  ;;  %778 = vst [vmem:[%s1425_s3 + $0x1d0] sm:$0xff] %v714_v2  ;;  %v683_v11 = vmax.f32 %v509_v3, 0.0  ;;  %v715_v12 = vmax.f32 %v637_v4, 0.0 }
 0x117   :  { %744 = vst [vmem:[%s1425_s3 + $0xc0] sm:$0xff] %v680_v7  ;;  %776 = vst [vmem:[%s1425_s3 + $0x1c0] sm:$0xff] %v712_v8  ;;  %v681_v13 = vmax.f32 %v501_v9, 0.0  ;;  %v713_v14 = vmax.f32 %v629_v10, 0.0 }
 0x118   :  { %747 = vst [vmem:[%s1425_s3 + $0xd8] sm:$0xff] %v683_v11  ;;  %779 = vst [vmem:[%s1425_s3 + $0x1d8] sm:$0xff] %v715_v12 }
 0x119   :  { %745 = vst [vmem:[%s1425_s3 + $0xc8] sm:$0xff] %v681_v13  ;;  %777 = vst [vmem:[%s1425_s3 + $0x1c8] sm:$0xff] %v713_v14  ;;  %v927_v15 = vpop.f32.mrb[28].mxu0  ;;  %v959_v16 = vpop.f32.mrb[28].mxu1 }
 0x11a   :  { %v522_v17 = vadd.f32 %v927_v15, %v1164_v36  ;;  %v650_v18 = vadd.f32 %v959_v16, %v1164_v36  ;;  %v513_v19 = vpop.f32.mrb[29].mxu0  ;;  %v641_v20 = vpop.f32.mrb[29].mxu1 }
 0x11b   :  { %v514_v21 = vadd.f32 %v1164_v36, %v513_v19  ;;  %v642_v22 = vadd.f32 %v1164_v36, %v641_v20  ;;  %v928_v23 = vpop.f32.mrb[30].mxu0  ;;  %v960_v24 = vpop.f32.mrb[30].mxu1 }
 0x11c   :  { %v686_v25 = vmax.f32 %v522_v17, 0.0  ;;  %v718_v26 = vmax.f32 %v650_v18, 0.0  ;;  %v525_v27 = vadd.f32 %v928_v23, %v1164_v36  ;;  %v653_v28 = vadd.f32 %v960_v24, %v1164_v36  ;;  %v516_v29 = vpop.f32.mrb[31].mxu0  ;;  %v644_v30 = vpop.f32.mrb[31].mxu1 }
 0x11d   :  { %v684_v31 = vmax.f32 %v514_v21, 0.0  ;;  %v716_v32 = vmax.f32 %v642_v22, 0.0  ;;  %v517_v33 = vadd.f32 %v1164_v36, %v516_v29  ;;  %v645_v34 = vadd.f32 %v1164_v36, %v644_v30 }
 0x11e   :  { %750 = vst [vmem:[%s1425_s3 + $0xf0] sm:$0xff] %v686_v25  ;;  %782 = vst [vmem:[%s1425_s3 + $0x1f0] sm:$0xff] %v718_v26  ;;  %v687_v35 = vmax.f32 %v525_v27, 0.0  ;;  %v719_v37 = vmax.f32 %v653_v28, 0.0 }
 0x11f   :  { %748 = vst [vmem:[%s1425_s3 + $0xe0] sm:$0xff] %v684_v31  ;;  %780 = vst [vmem:[%s1425_s3 + $0x1e0] sm:$0xff] %v716_v32  ;;  %v685_v38 = vmax.f32 %v517_v33, 0.0  ;;  %v717_v36 = vmax.f32 %v645_v34, 0.0 }
 0x120   :  { %751 = vst [vmem:[%s1425_s3 + $0xf8] sm:$0xff] %v687_v35  ;;  %783 = vst [vmem:[%s1425_s3 + $0x1f8] sm:$0xff] %v719_v37 }
 0x121   :  { %749 = vst [vmem:[%s1425_s3 + $0xe8] sm:$0xff] %v685_v38  ;;  %781 = vst [vmem:[%s1425_s3 + $0x1e8] sm:$0xff] %v717_v36 }

</bundles_post_ra>
